<compile_context>
chip_gen: v7x
topology: tpu7x:2x2x1
jax: 0.10.0
libtpu: 0.0.40
codegen_flags: <defaults>
</compile_context>

<pallas_src>
import functools

import jax
import jax.numpy as jnp
from jax import lax
from jax.experimental import pallas as pl
from jax.experimental.pallas import tpu as pltpu


def _ntxent_kernel(f_ref, t_ref, out_ref, xn_ref, xnt_ref, *,
                   temperature: float, batch_size: int, row_tile: int):
    b = batch_size
    two_b = 2 * b
    inv_sqrt_t = 1.0 / (float(temperature) ** 0.5)
    eps2 = 1e-24  # (F.normalize eps = 1e-12)^2
    op_dtype = xn_ref.dtype

    i = pl.program_id(0)

    # ---- one-time fill of the persistent scratches --------------------------
    @pl.when(i == 0)
    def _fill():
        f = f_ref[...].astype(jnp.float32)                  # (B, D)
        t = t_ref[...].astype(jnp.float32)                  # (B, D)
        # x / max(||x||, eps), with 1/sqrt(T) folded in so the MXU emits sim/T.
        f_scale = lax.rsqrt(jnp.maximum(jnp.sum(f * f, axis=-1, keepdims=True),
                                        eps2)) * inv_sqrt_t
        t_scale = lax.rsqrt(jnp.maximum(jnp.sum(t * t, axis=-1, keepdims=True),
                                        eps2)) * inv_sqrt_t
        x_all = jnp.concatenate([f * f_scale, t * t_scale], axis=0)   # (2B, D)
        xn_ref[...] = x_all.astype(op_dtype)                # row-major rows
        # Pre-transposed RHS: every per-step matmul sees (K, N) = (D, 2B),
        # so the transpose/relayout is paid exactly once.
        xnt_ref[...] = x_all.T.astype(op_dtype)             # (D, 2B)

    # ---- per-strip work ------------------------------------------------------
    q0 = pl.multiple_of(i * row_tile, row_tile)
    # Positive partner of rows [q0, q0+TQ) is rows [(q0+B) mod 2B, ...+TQ);
    # the wrapper enforces TQ | B so this never straddles the wrap.
    p0 = q0 + b
    p0 = jnp.where(p0 >= two_b, p0 - two_b, p0)
    p0 = pl.multiple_of(p0, row_tile)

    xq = xn_ref[pl.ds(q0, row_tile), :]                     # (TQ, D), pre-scaled
    xpq = xn_ref[pl.ds(p0, row_tile), :]                    # partner rows

    # (TQ, 2B) strip of sim/T — plain (M,K)x(K,N) MXU matmul, f32 accumulate.
    sim = lax.dot_general(xq, xnt_ref[...],
                          dimension_numbers=(((1,), (0,)), ((), ())),
                          preferred_element_type=jnp.float32)

    # diag / pos from the SAME (possibly bf16) operands the MXU saw, so the
    # analytic diagonal cancellation below is accurate to f32 accumulation.
    xq_f = xq.astype(jnp.float32)
    diag = jnp.sum(xq_f * xq_f, axis=-1, keepdims=True)          # = sim[r, q0+r]
    pos = jnp.sum(xq_f * xpq.astype(jnp.float32), axis=-1, keepdims=True)

    # Denominator with the diagonal "masked to zero before exp" handled
    # analytically: rowsum(exp(sim/T)) - exp(diag) + exp(0).
    # TODO(synk): run the exp in bf16 on v6e/v7x (EUP bf16 path, ~2x); kept f32
    #   so the same kernel remains safe on v5e.
    row_sum = jnp.sum(jnp.exp(sim), axis=-1, keepdims=True)       # (TQ, 1)
    den = row_sum - jnp.exp(diag) + 1.0

    # -log(exp(pos)/den) == log(den) - pos ; sum over this row strip.
    tile_partial = jnp.sum(jnp.log(den) - pos)

    # Lane-dense (8,128) partial-sum block (unmasked store); wrapper reads [:,0,0].
    out_ref[...] = jnp.zeros(out_ref.shape, jnp.float32) + tile_partial


def _pick_row_tile(batch_size: int, target: int) -> int:
    """Largest divisor of B (never straddles the +B wrap), preferring sublane
    (multiple-of-8) alignment, never collapsing to tiny tiles."""
    divs = [d for d in range(1, batch_size + 1) if batch_size % d == 0]
    aligned = [d for d in divs if d <= target and d % 8 == 0]
    if aligned:
        return max(aligned)
    under = [d for d in divs if d <= target]
    best = max(under) if under else batch_size
    return best if best >= 8 else batch_size


def _vmem_capacity_bytes() -> int:
    try:
        return int(pltpu.get_tpu_info().vmem_capacity_bytes)
    except Exception:
        return 64 * 2 ** 20  # conservative: v7x physical VMEM per TensorCore


def ntxent_loss(features: jax.Array, transformed_features: jax.Array,
                temperature: float = 0.5, row_tile: int = 256,
                operand_dtype=jnp.bfloat16) -> jax.Array:
    assert features.shape == transformed_features.shape
    assert features.ndim == 2
    b, d = features.shape
    two_b = 2 * b
    tq = _pick_row_tile(b, row_tile)            # tq | b  ->  tq | 2b
    num_tiles = two_b // tq

    kernel = functools.partial(_ntxent_kernel, temperature=float(temperature),
                               batch_size=b, row_tile=tq)

    # VMEM budget: 0.8 * physical capacity cap (v5e/v6e 128 MiB -> ~102 MiB,
    # v7x 64 MiB -> ~51 MiB), floor of 32 MiB, ~2x headroom over the estimate.
    bpe = jnp.dtype(operand_dtype).itemsize
    bytes_scratch = 2 * two_b * d * bpe         # xn + xn^T (filled once)
    bytes_inputs = 2 * (b * d * 4) * 2          # two f32 inputs, double-buffered
    bytes_strips = 3 * (tq * two_b * 4)         # sim strip, exp strip, slack
    est = bytes_scratch + bytes_inputs + bytes_strips + (2 << 20)
    vmem_limit = int(min(int(0.8 * _vmem_capacity_bytes()),
                         max(32 * 2 ** 20, 2 * est)))

    partials = pl.pallas_call(
        kernel,
        out_shape=jax.ShapeDtypeStruct((num_tiles, 8, 128), jnp.float32),
        grid_spec=pltpu.PrefetchScalarGridSpec(
            num_scalar_prefetch=0,
            grid=(num_tiles,),
            in_specs=[pl.BlockSpec((b, d), lambda i: (0, 0)),
                      pl.BlockSpec((b, d), lambda i: (0, 0))],
            out_specs=pl.BlockSpec((1, 8, 128), lambda i: (i, 0, 0)),
            scratch_shapes=[pltpu.VMEM((two_b, d), operand_dtype),
                            pltpu.VMEM((d, two_b), operand_dtype)],
        ),
        compiler_params=pltpu.CompilerParams(
            # "arbitrary": later strips read the scratch filled at step 0.
            dimension_semantics=("arbitrary",),
            vmem_limit_bytes=vmem_limit,
        ),
    )(features, transformed_features)

    return jnp.sum(partials[:, 0, 0]) / two_b


def _reference_ntxent(features, transformed_features, temperature=0.5):
    # Pure-JAX transcription of the PyTorch forward, for a sanity check.
    b = features.shape[0]
    x = jnp.concatenate([features, transformed_features], axis=0).astype(jnp.float32)
    x = x / jnp.maximum(jnp.linalg.norm(x, axis=-1, keepdims=True), 1e-12)
    sim = x @ x.T
    sim_ij = jnp.diagonal(sim, offset=b)
    sim_ji = jnp.diagonal(sim, offset=-b)
    positives = jnp.concatenate([sim_ij, sim_ji], axis=0)
    numerator = jnp.exp(positives / temperature)
    mask = jnp.ones((2 * b, 2 * b)) - jnp.eye(2 * b)
    denominator = jnp.exp(sim * mask / temperature).sum(axis=1)
    losses = -jnp.log(numerator / denominator)
    return jnp.sum(losses) / (2 * b)


if __name__ == "__main__":
    key = jax.random.PRNGKey(0)
    k1, k2, k3, k4 = jax.random.split(key, 4)

    # Small single-strip-per-half case (module takes (batch, feature_dim)).
    batch_size, feature_dim = 8, 32
    features = jax.random.normal(k1, (batch_size, feature_dim), dtype=jnp.float32)
    transformed = jax.random.normal(k2, (batch_size, feature_dim), dtype=jnp.float32)
    ref = _reference_ntxent(features, transformed, temperature=0.5)

    # f32 MXU operands: tight structural check against the f32 reference.
    loss_f32 = jax.block_until_ready(
        ntxent_loss(features, transformed, temperature=0.5,
                    operand_dtype=jnp.float32))
    assert jnp.allclose(loss_f32, ref, rtol=1e-4, atol=1e-4), (loss_f32, ref)

    # Default bf16 MXU operands (performance path): bf16-level tolerance.
    loss_bf16 = jax.block_until_ready(
        ntxent_loss(features, transformed, temperature=0.5))
    assert jnp.allclose(loss_bf16, ref, rtol=2e-2, atol=5e-2), (loss_bf16, ref)

    # Larger case exercising the multi-strip (gridded) path + partner wrap.
    b2, d2 = 64, 32
    f2 = jax.random.normal(k3, (b2, d2), dtype=jnp.float32)
    t2 = jax.random.normal(k4, (b2, d2), dtype=jnp.float32)
    ref2 = _reference_ntxent(f2, t2, temperature=0.5)
    loss2 = jax.block_until_ready(
        ntxent_loss(f2, t2, temperature=0.5, row_tile=16))
    assert jnp.allclose(loss2, ref2, rtol=2e-2, atol=5e-2), (loss2, ref2)

    print("KERNEL_OK")
</pallas_src>

<mosaic_0001>
module attributes {stable_mosaic.version = 11 : i64} {
  func.func @_ntxent_kernel(%arg0: i32, %arg1: memref<8x32xf32, #tpu.memory_space<vmem>>, %arg2: memref<8x32xf32, #tpu.memory_space<vmem>>, %arg3: memref<1x8x128xf32, #tpu.memory_space<vmem>>, %arg4: memref<16x32xf32, #tpu.memory_space<vmem>>, %arg5: memref<32x16xf32, #tpu.memory_space<vmem>>) attributes {dimension_semantics = [#tpu.dimension_semantics<arbitrary>], iteration_bounds = array<i64: 2>, scalar_prefetch = 0 : i64, scratch_operands = 2 : i64, tpu.core_type = #tpu.core_type<tc>, window_params = [{pipeline_mode = #tpu.pipeline_mode<synchronous>, transform_indices = @transform_0, window_bounds = array<i64: 8, 32>}, {pipeline_mode = #tpu.pipeline_mode<synchronous>, transform_indices = @transform_1, window_bounds = array<i64: 8, 32>}, {transform_indices = @transform_2, window_bounds = array<i64: 1, 8, 128>}]} {
    %c0_i32 = arith.constant 0 : i32
    %0 = arith.cmpi eq, %arg0, %c0_i32 : i32
    %1 = arith.extui %0 : i1 to i32
    %c0_i32_0 = arith.constant 0 : i32
    %2 = arith.cmpi ne, %1, %c0_i32_0 : i32
    scf.if %2 {
      %c0_15 = arith.constant 0 : index
      %c0_16 = arith.constant 0 : index
      %39 = vector.load %arg1[%c0_15, %c0_16] : memref<8x32xf32, #tpu.memory_space<vmem>>, vector<8x32xf32>
      %c0_17 = arith.constant 0 : index
      %c0_18 = arith.constant 0 : index
      %40 = vector.load %arg2[%c0_17, %c0_18] : memref<8x32xf32, #tpu.memory_space<vmem>>, vector<8x32xf32>
      %41 = arith.mulf %39, %39 : vector<8x32xf32>
      %cst_19 = arith.constant dense<0.000000e+00> : vector<8xf32>
      %42 = vector.multi_reduction <add>, %41, %cst_19 [1] : vector<8x32xf32> to vector<8xf32>
      %43 = vector.shape_cast %42 : vector<8xf32> to vector<8x1xf32>
      %cst_20 = arith.constant 1.000000e-24 : f32
      %44 = vector.broadcast %cst_20 : f32 to vector<8x1xf32>
      %45 = arith.maximumf %43, %44 : vector<8x1xf32>
      %46 = math.rsqrt %45 : vector<8x1xf32>
      %cst_21 = arith.constant 1.41421354 : f32
      %47 = vector.broadcast %cst_21 : f32 to vector<8x1xf32>
      %48 = arith.mulf %46, %47 : vector<8x1xf32>
      %49 = arith.mulf %40, %40 : vector<8x32xf32>
      %cst_22 = arith.constant dense<0.000000e+00> : vector<8xf32>
      %50 = vector.multi_reduction <add>, %49, %cst_22 [1] : vector<8x32xf32> to vector<8xf32>
      %51 = vector.shape_cast %50 : vector<8xf32> to vector<8x1xf32>
      %cst_23 = arith.constant 1.000000e-24 : f32
      %52 = vector.broadcast %cst_23 : f32 to vector<8x1xf32>
      %53 = arith.maximumf %51, %52 : vector<8x1xf32>
      %54 = math.rsqrt %53 : vector<8x1xf32>
      %cst_24 = arith.constant 1.41421354 : f32
      %55 = vector.broadcast %cst_24 : f32 to vector<8x1xf32>
      %56 = arith.mulf %54, %55 : vector<8x1xf32>
      %57 = vector.broadcast %48 : vector<8x1xf32> to vector<8x32xf32>
      %58 = arith.mulf %39, %57 : vector<8x32xf32>
      %59 = vector.broadcast %56 : vector<8x1xf32> to vector<8x32xf32>
      %60 = arith.mulf %40, %59 : vector<8x32xf32>
      %61 = tpu.concatenate %58, %60 in 0 : vector<8x32xf32>, vector<8x32xf32> -> vector<16x32xf32>
      %c0_25 = arith.constant 0 : index
      %c0_26 = arith.constant 0 : index
      %62 = vector.load %arg4[%c0_25, %c0_26] : memref<16x32xf32, #tpu.memory_space<vmem>>, vector<16x32xf32>
      tpu.vector_store %arg4[%c0_25, %c0_26], %61 {strides = array<i32>} : memref<16x32xf32, #tpu.memory_space<vmem>>, vector<16x32xf32>,
      %63 = tpu.transpose %61, [1, 0] : vector<16x32xf32> -> vector<32x16xf32>
      %c0_27 = arith.constant 0 : index
      %c0_28 = arith.constant 0 : index
      %64 = vector.load %arg5[%c0_27, %c0_28] : memref<32x16xf32, #tpu.memory_space<vmem>>, vector<32x16xf32>
      tpu.vector_store %arg5[%c0_27, %c0_28], %63 {strides = array<i32>} : memref<32x16xf32, #tpu.memory_space<vmem>>, vector<32x16xf32>,
    } else {
    }
    %c8_i32 = arith.constant 8 : i32
    %3 = arith.muli %arg0, %c8_i32 : i32
    %4 = tpu.assume_multiple %3, 8 : i32
    %c8_i32_1 = arith.constant 8 : i32
    %5 = arith.addi %4, %c8_i32_1 : i32
    %c16_i32 = arith.constant 16 : i32
    %6 = arith.cmpi sge, %5, %c16_i32 : i32
    %c16_i32_2 = arith.constant 16 : i32
    %7 = arith.subi %5, %c16_i32_2 : i32
    %8 = arith.select %6, %7, %5 : i32
    %9 = tpu.assume_multiple %8, 8 : i32
    %10 = arith.index_cast %4 : i32 to index
    %c0 = arith.constant 0 : index
    %11 = vector.load %arg4[%10, %c0] : memref<16x32xf32, #tpu.memory_space<vmem>>, vector<8x32xf32>
    %12 = arith.index_cast %9 : i32 to index
    %c0_3 = arith.constant 0 : index
    %13 = vector.load %arg4[%12, %c0_3] : memref<16x32xf32, #tpu.memory_space<vmem>>, vector<8x32xf32>
    %c0_4 = arith.constant 0 : index
    %c0_5 = arith.constant 0 : index
    %14 = vector.load %arg5[%c0_4, %c0_5] : memref<32x16xf32, #tpu.memory_space<vmem>>, vector<32x16xf32>
    %cst = arith.constant dense<0.000000e+00> : vector<8x16xf32>
    %15 = tpu.matmul %11, %14, %cst {dimension_numbers = #tpu.dot_dimension_numbers<[1], [0], [0], [1], [0, 0, 1, 1], [], []>} : vector<8x32xf32>, vector<32x16xf32>, vector<8x16xf32> -> vector<8x16xf32>
    %16 = arith.mulf %11, %11 : vector<8x32xf32>
    %cst_6 = arith.constant dense<0.000000e+00> : vector<8xf32>
    %17 = vector.multi_reduction <add>, %16, %cst_6 [1] : vector<8x32xf32> to vector<8xf32>
    %18 = vector.shape_cast %17 : vector<8xf32> to vector<8x1xf32>
    %19 = arith.mulf %11, %13 : vector<8x32xf32>
    %cst_7 = arith.constant dense<0.000000e+00> : vector<8xf32>
    %20 = vector.multi_reduction <add>, %19, %cst_7 [1] : vector<8x32xf32> to vector<8xf32>
    %21 = vector.shape_cast %20 : vector<8xf32> to vector<8x1xf32>
    %22 = math.exp %15 : vector<8x16xf32>
    %cst_8 = arith.constant dense<0.000000e+00> : vector<8xf32>
    %23 = vector.multi_reduction <add>, %22, %cst_8 [1] : vector<8x16xf32> to vector<8xf32>
    %24 = vector.shape_cast %23 : vector<8xf32> to vector<8x1xf32>
    %25 = math.exp %18 : vector<8x1xf32>
    %26 = arith.subf %24, %25 : vector<8x1xf32>
    %cst_9 = arith.constant 1.000000e+00 : f32
    %27 = vector.broadcast %cst_9 : f32 to vector<8x1xf32>
    %28 = arith.addf %26, %27 : vector<8x1xf32>
    %29 = math.log %28 : vector<8x1xf32>
    %30 = arith.subf %29, %21 : vector<8x1xf32>
    %31 = vector.shape_cast %30 : vector<8x1xf32> to vector<1x8x1xf32>
    %cst_10 = arith.constant dense<0.000000e+00> : vector<1xf32>
    %32 = vector.multi_reduction <add>, %31, %cst_10 [1, 2] : vector<1x8x1xf32> to vector<1xf32>
    %33 = vector.shape_cast %32 : vector<1xf32> to vector<1x1x1xf32>
    %34 = vector.extract %33[0, 0, 0] : f32 from vector<1x1x1xf32>
    %cst_11 = arith.constant 0.000000e+00 : f32
    %35 = vector.broadcast %cst_11 : f32 to vector<1x8x128xf32>
    %36 = vector.broadcast %34 : f32 to vector<1x8x128xf32>
    %37 = arith.addf %35, %36 : vector<1x8x128xf32>
    %c0_12 = arith.constant 0 : index
    %c0_13 = arith.constant 0 : index
    %c0_14 = arith.constant 0 : index
    %38 = vector.load %arg3[%c0_12, %c0_13, %c0_14] : memref<1x8x128xf32, #tpu.memory_space<vmem>>, vector<1x8x128xf32>
    tpu.vector_store %arg3[%c0_12, %c0_13, %c0_14], %37 {strides = array<i32>} : memref<1x8x128xf32, #tpu.memory_space<vmem>>, vector<1x8x128xf32>,
    return
  }
  func.func @transform_0(%arg0: i32) -> (i32, i32) {
    %c0_i32 = arith.constant 0 : i32
    %c0_i32_0 = arith.constant 0 : i32
    %c0_i32_1 = arith.constant 0 : i32
    return %c0_i32, %c0_i32_0 : i32, i32
  }
  func.func @transform_1(%arg0: i32) -> (i32, i32) {
    %c0_i32 = arith.constant 0 : i32
    %c0_i32_0 = arith.constant 0 : i32
    %c0_i32_1 = arith.constant 0 : i32
    return %c0_i32, %c0_i32_0 : i32, i32
  }
  func.func @transform_2(%arg0: i32) -> (i32, i32, i32) {
    %c0_i32 = arith.constant 0 : i32
    %c0_i32_0 = arith.constant 0 : i32
    %c0_i32_1 = arith.constant 0 : i32
    return %arg0, %c0_i32, %c0_i32_0 : i32, i32, i32
  }
}

</mosaic_0001>

<bundles_post_ra>
// kernel: tpu_custom_call.1
= control target key start
LH: loop header
LB: loop body
LE: loop exit
PB: predicated region body
PF: predicated region fallthrough
CT: control target
= control target key end

     0   :  { %7 = vsyncpa [#allocation5], 0  ;;  %s866_s0 = inlined_call_operand.hbm [shape: f32[8,32], index: 0, kind: input, shape index: {}]   ;;  %s867_s1 = inlined_call_operand.hbm [shape: f32[8,32], index: 1, kind: input, shape index: {}]   ;;  %s868_s2 = inlined_call_operand.hbm [shape: f32[2,8,128], index: 2, kind: output, shape index: {}]  }
   0x1   :  { %8 = vsyncpa [#allocation8], 0 }
   0x2   :  { %9 = vsyncpa [#allocation6], 0 }
   0x3   :  { %11 = vsyncpa [#allocation6 + $0x1], 0  ;;  %s680_s9 = smov 0   ;;  %s682_s10 = smov 0  }
   0x4   :  { %s684_s11 = smov 0   ;;  %s686_s12 = smov 0  }
   0x5 LB: > { %s701_s13 = sadd.s32 4294967295, %s657_s12   ;;  %s418_s14 = sadd.s32 4294967294, %s657_s12   ;;  %s657_s12 = sphi %s686_s12, %s887_s12   ;;  %s653_s11 = sphi %s684_s11, %s886_s11   ;;  %s649_s10 = sphi %s682_s10, %s885_s10   ;;  %s645_s9 = sphi %s680_s9, %s884_s9  }
   0x6   : > { %s705_s15 = sadd.s32 1, %s657_s12   ;;  %s66_s16 = sadd.s32 1, %s653_s11 }
   0x7   : > { %s63_s17 = ssub.s32 %s657_s12, %s705_s15  ;;  %p76_p0 = scmp.ne.s32.totalorder %s653_s11, %s649_s10 }
   0x8   : > { %p64_p1 = scmp.eq.s32.totalorder %s63_s17, 0  ;;  %p77_p2 = scmp.eq.s32.totalorder %s701_s13, 1 }
   0x9   : > { %p82_p3 = scmp.ne.s32.totalorder %s649_s10, %s645_s9  ;;  %p83_p4 = scmp.eq.s32.totalorder %s418_s14, 1 }
   0xa   : > { %s716_s18 = scalar_select %p64_p1, %s653_s11, %s66_s16  }
   0xb   : > { %p718_p5 = por %p77_p2, %p76_p0  ;;  %p722_p6 = por %p83_p4, %p82_p3 }
   0xc   : > { %p419_p7 = scmp.ge.s32.totalorder %s657_s12, 1  ;;  %p90_p8 = scmp.lt.s32.totalorder %s657_s12, 3 }
   0xd   : > { %s872_s19 = scalar_select %p718_p5, 1, 0 }
   0xe   : > { %s873_s20 = scalar_select %p722_p6, 1, 0 }
   0xf   : > { %p869_p10 = scmp.eq.s32.totalorder %s701_s13, 0  ;;  %p730_p11 = pnand %p419_p7, %p90_p8 }
  0x10   : > { %s659_s22 = smov [#allocation4]   ;;  %s660_s24 = smov [#allocation7]  }
  0x11   : > { %s874_s21 = scalar_select %p730_p11, 1, 0 }
  0x12   : > { %s103_s23 = sshll.u32 %s659_s22, 4  ;;  %p467_p12 = pneg %p730_p11  ;;  %s104_s23 = int_to_ptr.vmem [resolvable:$true] %s103_s23 }
  0x13   : > { %s114_s25 = sshll.u32 %s660_s24, 4  ;;  %s531_s29 = scalar_lea.hbm %s866_s0, 128  ;;  %s742_s25 = int_to_ptr.vmem [resolvable:$true] %s114_s25 }
  0x14   : > { %p738_p13 = pnand %p869_p10, %p467_p12  ;;  %p532_p0 = scmp.ne.s32.totalorder %s866_s0, %s531_s29 }
  0x15   : > { %p538_p4 = scmp.lt.u32.totalorder %s531_s29, %s866_s0 }
  0x16   : > { %p533_p1 = pneg %p738_p13 }
  0x18   : > { %p534_p2 = pnand %p533_p1, %p532_p0 }
  0x1a   : > { %p535_p3 = pneg %p534_p2 }
  0x1c   : > { %p540_p7 = pnand %p538_p4, %p535_p3 }
  0x1e   : > { %543 = shalt.err (!%p540_p7)
}
  0x1f   : > { %s544_s6 = scalar_lea.vmem %s104_s23, 128  ;;  %p552_p10 = scmp.lt.s32.totalorder %s104_s23, %s104_s23 }
  0x20   : > { %p545_p8 = scmp.ne.s32.totalorder %s104_s23, %s544_s6  ;;  %p553_p6 = scmp.lt.s32.totalorder %s544_s6, %s544_s6 }
  0x22   : > { %p547_p12 = pnand %p545_p8, %p533_p1  ;;  %p554_p5 = por %p553_p6, %p552_p10 }
  0x24   : > { %p548_p9 = pneg %p547_p12 }
  0x26   : > { %p555_p11 = pnand %p554_p5, %p548_p9 }
  0x28   : > { %558 = shalt.err (!%p555_p11)
}
  0x29   : > { %470 = dma.hbm_to_vmem [thread:$0]  (!%p738_p13), %s866_s0, 128, %s104_s23, [#allocation5]  }
  0x2a   : > { %s559_s17 = scalar_lea.hbm %s867_s1, 128 }
  0x2b   : > { %p560_p0 = scmp.ne.s32.totalorder %s867_s1, %s559_s17  ;;  %p566_p9 = scmp.lt.u32.totalorder %s559_s17, %s867_s1 }
  0x2d   : > { %p562_p6 = pnand %p560_p0, %p533_p1 }
  0x2f   : > { %p563_p5 = pneg %p562_p6 }
  0x31   : > { %p568_p10 = pnand %p566_p9, %p563_p5 }
  0x33   : > { %571 = shalt.err (!%p568_p10)
}
  0x34   : > { %s572_s23 = scalar_lea.vmem %s742_s25, 128  ;;  %p580_p4 = scmp.lt.s32.totalorder %s742_s25, %s742_s25 }
  0x35   : > { %p573_p11 = scmp.ne.s32.totalorder %s742_s25, %s572_s23  ;;  %p581_p7 = scmp.lt.s32.totalorder %s572_s23, %s572_s23 }
  0x37   : > { %p575_p2 = pnand %p573_p11, %p533_p1  ;;  %p582_p8 = por %p581_p7, %p580_p4 }
  0x39   : > { %p576_p3 = pneg %p575_p2 }
  0x3b   : > { %p583_p12 = pnand %p582_p8, %p576_p3 }
  0x3d   : > { %586 = shalt.err (!%p583_p12)
}
  0x3e   : > { %473 = dma.hbm_to_vmem [thread:$0]  (!%p738_p13), %s867_s1, 128, %s742_s25, [#allocation8]  }
  0x3f   : > { %p876_p0 = scmp.ne.s32.totalorder %s874_s21, 0 }
  0x40   : > { %p877_p6 = scmp.eq.s32.totalorder (!%p876_p0), %s701_s13, 0 }
  0x41   : > { %127 = sbr.rel (%p876_p0) target bundleno = 1002 (0x3ea), region = 28 }
  0x48   : > { %632 = dma.done.wait (%p877_p6), [#allocation5], 128   ;;  %p878_p1 = pmov %p877_p6 }
  0x4a   : > { %634 = vsyncadd (%p878_p1), [#allocation5], 4294967168  ;;  %p879_p5 = pmov %p878_p1 }
  0x4b   : > { %p880_p9 = pmov %p878_p1 }
  0x4c   : > { %636 = dma.done.wait (%p879_p5), [#allocation8], 128  }
  0x4d   : > { %638 = vsyncadd (%p880_p9), [#allocation8], 4294967168  ;;  %s145_s26 = sand.u32 1, %s649_s10   ;;  %p881_p13 = scmp.ne.s32.totalorder %s701_s13, 0 }
  0x4e   : > { %s804_s25 = sshll.u32 %s145_s26, 3  ;;  %v152_v0 = vld [vmem:[#allocation4] sm:$0xff] (!%p881_p13)  ;;  %vm155_vm0 = vcmask (!%p881_p13), 261120   ;;  %v153_v1 = vld [vmem:[#allocation7] sm:$0xff] (!%p881_p13)  ;;  %vm205_vm1 = vcmask (!%p881_p13), 130048  }
  0x4f   : > { %s147_s21 = scalar_lea.vmem [#allocation9], %s804_s25  ;;  %151 = sbr.rel (%p881_p13) target bundleno = 383 (0x17f), region = 40  ;;  %v154_v2 = vmul.f32 (!%p881_p13), %v152_v0, %v152_v0  ;;  %v162_v3 = vmul.f32 (!%p881_p13), %v153_v1, %v153_v1 }
  0x51   : > { %v156_v4 = vsel (!%p881_p13), %vm155_vm0, %v154_v2, 0.0  ;;  %v163_v5 = vsel (!%p881_p13), %vm155_vm0, %v162_v3, 0.0 }
  0x52   : > { %157 = vadd.xlane.f32.xlu0 (!%p881_p13), %v156_v4 }
  0x56   : > { %164 = vadd.xlane.f32.xlu0 %v163_v5 }
  0xdf   : > { %v158_v6 = vpop.xlane.xlu0 %157 }
  0xe0   : > { %v159_v7 = vmax.f32 %v158_v6, 1e-24 }
  0xe2   : > { %521 = vrsqrt.f32 %v159_v7 }
  0xe3   : > { %v165_v8 = vpop.xlane.xlu0 %164 }
  0xe4   : > { %v166_v9 = vmax.f32 %v165_v8, 1e-24 }
  0xe6   : > { %523 = vrsqrt.f32 %v166_v9 }
  0xec   : > { %v522_v10 = vpop.eup %521 }
  0xed   : > { %v161_v11 = vmul.f32 1.4142135, %v522_v10 }
  0xef   : > { %v169_v12 = vmul.f32 %v161_v11, %v152_v0 }
  0xf0   : > { %v524_v13 = vpop.eup %523 }
  0xf1   : > { %v168_v14 = vmul.f32 1.4142135, %v524_v13  ;;  %173 = vxpose.xlu1.b32.start [1/2] (short) (narrow) %v169_v12, 32  ;;  %171 = vst.msk [vmem:[#allocation2] sm:$0xff] %vm155_vm0, %v169_v12 }
  0xf3   : > { %v170_v15 = vmul.f32 %v168_v14, %v153_v1 }
  0xf5   : > { %174 = vxpose.xlu1.b32.end [2/2] (short) (narrow) %v170_v15, 32  ;;  %172 = vst.msk [vmem:[#allocation2 + $0x8] sm:$0xff] %vm155_vm0, %v170_v15 }
 0x171   : > { %v189_v16 = vpop.trf.xlu1 }
 0x172   : > { %206 = vst.msk [vmem:[#allocation3] sm:$0xff] %vm205_vm1, %v189_v16 }
 0x175   : > { %v190_v17 = vpop.trf.xlu1 }
 0x176   : > { %207 = vst.msk [vmem:[#allocation3 + $0x8] sm:$0xff] %vm205_vm1, %v190_v17 }
 0x179   : > { %v191_v18 = vpop.trf.xlu1 }
 0x17a   : > { %208 = vst.msk [vmem:[#allocation3 + $0x10] sm:$0xff] %vm205_vm1, %v191_v18 }
 0x17d   : > { %v192_v19 = vpop.trf.xlu1 }
 0x17e   : > { %209 = vst.msk [vmem:[#allocation3 + $0x18] sm:$0xff] %vm205_vm1, %v192_v19 }
 0x17f PF: > { %v219_v20 = vld [vmem:[#allocation3] sm:$0xff]  ;;  %v220_v21 = vld [vmem:[#allocation3 + $0x8] sm:$0xff]  ;;  %v661_v23 = vmov 0.0|0.0   ;;  %vm662_vm2 = vmmov 0   ;;  %v663_v26 = vmov 0.0   ;;  %s427_s3 = sshll.u32 %s701_s13, 3 }
 0x180   : > { %449 = vmatprep.subr.bf16.mxu0 %v661_v23  ;;  %v450_v24 = vpack.c.bf16 %v220_v21, %v219_v20  ;;  %446 = vmatprep.mubr.msk.f32.mxu0 %vm662_vm2, %v663_v26  ;;  %s215_s4 = scalar_lea.vmem [#allocation2], %s427_s3  ;;  %vm223_vm3 = vcmask 261120   ;;  %s211_s5 = sadd.s32 8, %s427_s3  ;;  %vm307_vm4 = vcmask 130048   ;;  %vm318_vm5 = vcmask 7168  }
 0x181   : > { %v221_v22 = vld [vmem:[#allocation3 + $0x10] sm:$0xff]  ;;  %s213_s6 = sadd.s32 4294967288, %s427_s3  ;;  %p212_p10 = scmp.ge.s32.totalorder %s211_s5, 16 }
 0x182   : > { %451 = vmatpush3.bf16.msra.mxu0 %v450_v24  ;;  %v216_v28 = vld [vmem:[%s215_s4] sm:$0xff]  ;;  %s430_s8 = sshll.u32 %s701_s13, 7  ;;  %s346_s14 = sshll.u32 %s147_s21, 4  ;;  %s822_s14 = int_to_ptr.vmem [resolvable:$true] %s346_s14 }
 0x183   : > { %452 = vmatprep.subr.bf16.mxu0 %v661_v23  ;;  %v297_v29 = vmul.f32 %v216_v28, %v216_v28  ;;  %s889_s6 = smov (!%p212_p10, %s213_s6), %s211_s5  ;;  %s820_s22 = scalar_lea.hbm %s868_s2, %s430_s8 }
 0x184   : > { %s217_s7 = scalar_lea.vmem [#allocation2], %s889_s6  ;;  %s333_s27 = scalar_lea.sflag [#allocation6], %s145_s26 }
 0x185   : > { %v222_v25 = vld [vmem:[#allocation3 + $0x18] sm:$0xff]  ;;  %v298_v30 = vsel %vm223_vm3, %v297_v29, 0.0  ;;  %v218_v31 = vld [vmem:[%s217_s7] sm:$0xff]  ;;  %s587_s28 = scalar_lea.vmem %s822_s14, 128  ;;  %p882_p2 = scmp.ne.s32.totalorder %s872_s19, 0 }
 0x186   : > { %v453_v27 = vpack.c.bf16 %v222_v25, %v221_v22  ;;  %299 = vadd.xlane.f32.xlu0 %v298_v30  ;;  %v301_v32 = vmul.f32 %v218_v31, %v216_v28  ;;  %p588_p11 = scmp.ne.s32.totalorder %s822_s14, %s587_s28  ;;  %s664_s13 = smov [#allocation9]  }
 0x187   : > { %s591_s23 = sshll.u32 %s664_s13, 4  ;;  %s592_s23 = int_to_ptr.vmem [resolvable:$false] %s591_s23 }
 0x188   : > { %454 = vmatpush3.bf16.msra.mxu0 %v453_v27  ;;  %v302_v33 = vsel %vm223_vm3, %v301_v32, 0.0  ;;  %p589_p3 = pnand %p588_p11, %p882_p2  ;;  %s593_s29 = scalar_lea.vmem %s592_s23, 256 }
 0x189   : > { %303 = vadd.xlane.f32.xlu1 %v302_v33  ;;  %p594_p7 = scmp.lt.s32.totalorder %s822_s14, %s592_s23  ;;  %p595_p8 = scmp.lt.s32.totalorder %s593_s29, %s587_s28 }
 0x18a   : > { %p590_p4 = pneg %p589_p3 }
 0x18b   : > { %447 = vmatmul.mubr.msk.f32.vlgmr.msra.gmra.mrb[0].mxu0 %vm223_vm3, %v216_v28  ;;  %p596_p12 = por %p595_p8, %p594_p7 }
 0x18d   : > { %p597_p0 = pnand %p596_p12, %p590_p4 }
 0x213   : > { %v300_v39 = vpop.xlane.xlu0 %299 }
 0x214   : > { %v311_v40 = vmul.f32 1.442695, %v300_v39 }
 0x216   : > { %v304_v46 = vpop.xlane.xlu1 %303 }
 0x25e   : > { %v293_v34 = vpop.f32.mrb[0].mxu0 }
 0x25f   : > { %v305_v35 = vmul.f32 1.442695, %v293_v34  ;;  %v448_v36 = vpop.f32.mrb[1].mxu0 }
 0x261   : > { %525 = vpow2.f32 %v305_v35 }
 0x262   : > { %527 = vpow2.f32 %v311_v40 }
 0x26b   : > { %v526_v37 = vpop.eup %525 }
 0x26c   : > { %v308_v38 = vsel %vm307_vm4, %v526_v37, 0.0  ;;  %v528_v41 = vpop.eup %527 }
 0x26d   : > { %309 = vadd.xlane.f32.xlu0 %v308_v38 }
 0x2fa   : > { %v310_v42 = vpop.xlane.xlu0 %309 }
 0x2fb   : > { %v313_v43 = vsub.f32 %v310_v42, %v528_v41 }
 0x2fd   : > { %v314_v44 = vadd.f32 1.0, %v313_v43 }
 0x2ff   : > { %529 = vlog2.f32 %v314_v44 }
 0x309   : > { %v530_v45 = vpop.eup %529 }
 0x30a   : > { %v316_v47 = vmul.f32 0.6931472, %v530_v45 }
 0x30c   : > { %v317_v48 = vsub.f32 %v316_v47, %v304_v46 }
 0x30e   : > { %v319_v49 = vsel %vm318_vm5, %v317_v48, 0.0 }
 0x30f   : > { %320 = vadd.xlane.f32.xlu1 %v319_v49 }
 0x39c   : > { %v321_v50 = vpop.xlane.xlu1 %320 }
 0x39d   : > { %v322_v51 = vrot.slane %v321_v50, 4 }
 0x39f   : > { %v323_v52 = vadd.f32 %v322_v51, %v321_v50 }
 0x3a1   : > { %v324_v53 = vrot.slane %v323_v52, 2 }
 0x3a3   : > { %v325_v54 = vadd.f32 %v324_v53, %v323_v52 }
 0x3a5   : > { %v326_v55 = vrot.slane %v325_v54, 1 }
 0x3a7   : > { %v327_v56 = vadd.f32 %v326_v55, %v325_v54 }
 0x3a9   : > { %455 = vpush %v327_v56 }
 0x3da   : > { %s456_s24 = spop %455 }
 0x3db   : > { %v329_v57 = vstv %s456_s24 }
 0x3dc   : > { %331 = vst [vmem:[%s147_s21] sm:$0xff] %v329_v57 }
 0x3dd   : > { %600 = shalt.err (!%p597_p0)
}
 0x3de   : > { %s601_s30 = scalar_lea.hbm %s820_s22, 128  ;;  %s605_s21 = scalar_lea.hbm %s868_s2, 256 }
 0x3df   : > { %p602_p6 = scmp.ne.s32.totalorder %s820_s22, %s601_s30  ;;  %p606_p9 = scmp.lt.u32.totalorder %s820_s22, %s868_s2 }
 0x3e0   : > { %p607_p13 = scmp.lt.u32.totalorder %s605_s21, %s601_s30  ;;  %p609_p11 = scmp.lt.u32.totalorder %s601_s30, %s820_s22 }
 0x3e1   : > { %p603_p1 = pnand %p602_p6, %p882_p2 }
 0x3e2   : > { %p608_p10 = por %p607_p13, %p606_p9 }
 0x3e3   : > { %p604_p5 = pneg %p603_p1 }
 0x3e4   : > { %p610_p3 = por %p609_p11, %p608_p10 }
 0x3e6   : > { %p611_p4 = pnand %p610_p3, %p604_p5 }
 0x3e8   : > { %614 = shalt.err (!%p611_p4)
}
 0x3e9   : > { %465 = dma.vmem_to_hbm [thread:$0]  (%p882_p2), %s822_s14, 128, %s820_s22, %s333_s27  }
 0x3ea PF: > { %p482_p7 = scmp.ge.s32.totalorder %s657_s12, 2  ;;  %s358_s5 = sand.u32 1, %s645_s9  }
 0x3eb   : > { %p883_p8 = scmp.ne.s32.totalorder %s873_s20, 0  ;;  %s359_s6 = scalar_lea.sflag [#allocation6], %s358_s5 }
 0x3ed   : > { %p475_p12 = pnand %p482_p7, %p883_p8 }
 0x3ef   : > { %640 = dma.done.wait (!%p475_p12), %s359_s6, 128  }
 0x3f0   : > { %642 = vsyncadd (!%p475_p12), %s359_s6, 4294967168  ;;  %p14_p0 = scmp.ge.s32.totalorder %s705_s15, 4   ;;  %s884_s9 = smov %s649_s10 }
 0x3f1   : > { %s885_s10 = smov %s653_s11  ;;  %s886_s11 = smov %s716_s18 }
 0x3f2   : > { %s887_s12 = smov %s705_s15  ;;  %16 = sbr.rel (!%p14_p0) target bundleno = 5 (0x5), region = 75 }
 0x3f9   :  { %364 = vsyncpa [#allocation5], 1 }
 0x3fa   :  { %366 = vsyncpa [#allocation5 + $0x1], 1 }
 0x3fb   :  { %367 = vsyncpa [#allocation8], 1 }
 0x3fc   :  { %368 = vsyncpa [#allocation6], 1 }
 0x3fd   :  { %370 = vsyncpa [#allocation6 + $0x1], 1 }

</bundles_post_ra>
